<compile_context>
chip_gen: v5e
topology: v5e:2x2
jax: 0.10.0
libtpu: 0.0.40
codegen_flags: <defaults>
</compile_context>

<pallas_src>
import functools

import jax
import jax.numpy as jnp
from jax.experimental import pallas as pl
from jax.experimental.pallas import tpu as pltpu


def _round_up(x, m):
    return ((x + m - 1) // m) * m


def _pick_tile(n, desired=512):
    """Row/col tile: a multiple-of-128 divisor of the 128-padded node count, <= desired."""
    npad = _round_up(n, 128)
    if npad <= desired:
        return npad, npad
    for t in range(desired, 127, -128):
        if npad % t == 0:
            return t, npad
    return desired, _round_up(npad, desired)  # unreachable (128 | npad); safety net


# --------------------------------------------------------------------------
# Kernel 1: row-tiled feature transform   XW = rsqrt(out_deg) * (X @ W)  -> bf16
# Computed once per layer; the (N, Hpad) bf16 result is re-used by every dst tile
# of the aggregation kernel. bf16 x bf16 MXU dot with f32 accumulation.
# --------------------------------------------------------------------------
def _transform_kernel(x_ref, w_ref, scale_ref, o_ref):
    xw = jnp.dot(x_ref[...], w_ref[...], preferred_element_type=jnp.float32)
    o_ref[...] = (scale_ref[...] * xw).astype(o_ref.dtype)


def _feature_transform(x, w, out_scale, *, tm):
    n, f = x.shape
    h = w.shape[1]
    return pl.pallas_call(
        _transform_kernel,
        out_shape=jax.ShapeDtypeStruct((n, h), jnp.bfloat16),
        grid_spec=pltpu.PrefetchScalarGridSpec(
            num_scalar_prefetch=0,
            grid=(n // tm,),
            in_specs=[
                pl.BlockSpec((tm, f), lambda i: (i, 0)),
                pl.BlockSpec((f, h), lambda i: (0, 0)),      # weights stay resident
                pl.BlockSpec((tm, 1), lambda i: (i, 0)),
            ],
            out_specs=pl.BlockSpec((tm, h), lambda i: (i, 0)),
        ),
        compiler_params=pltpu.CompilerParams(
            dimension_semantics=("parallel",),
            vmem_limit_bytes=48 * 1024 * 1024,
        ),
    )(x, w, out_scale)


# --------------------------------------------------------------------------
# Kernel 2: tiled aggregation   H = rsqrt(in_deg) * (A @ XW) + b   (optional relu)
# grid = (dst row tiles [parallel], src tiles [reduction, arbitrary, last]).
# A is streamed as int8 0/1 (exact), upcast to bf16 in-kernel; bf16 x bf16 MXU dot
# with an f32 VMEM accumulator; scale/bias/relu fused into the epilogue.
# --------------------------------------------------------------------------
def _aggregate_kernel(a_ref, xw_ref, scale_ref, b_ref, o_ref, acc_ref, *, relu):
    k = pl.program_id(1)

    @pl.when(k == 0)
    def _():
        acc_ref[...] = jnp.zeros_like(acc_ref)

    # int8 {0,1} -> f32 -> bf16 is exact; keeps the dot in fast bf16 MXU mode.
    a = a_ref[...].astype(jnp.float32).astype(jnp.bfloat16)
    acc_ref[...] += jnp.dot(a, xw_ref[...], preferred_element_type=jnp.float32)

    @pl.when(k == pl.num_programs(1) - 1)
    def _():
        h = scale_ref[...] * acc_ref[...] + b_ref[...]
        if relu:
            h = jnp.maximum(h, 0.0)
        o_ref[...] = h.astype(o_ref.dtype)


def _aggregate(a, xw, in_scale, bias, *, relu, out_dtype, tm, tk):
    n = a.shape[0]
    h = xw.shape[1]
    kernel = functools.partial(_aggregate_kernel, relu=relu)
    return pl.pallas_call(
        kernel,
        out_shape=jax.ShapeDtypeStruct((n, h), out_dtype),
        grid_spec=pltpu.PrefetchScalarGridSpec(
            num_scalar_prefetch=0,
            grid=(n // tm, n // tk),
            in_specs=[
                pl.BlockSpec((tm, tk), lambda i, k: (i, k)),   # A[dst, src] tile (int8)
                pl.BlockSpec((tk, h), lambda i, k: (k, 0)),    # XW src slab (bf16)
                pl.BlockSpec((tm, 1), lambda i, k: (i, 0)),    # rsqrt(in_deg)
                pl.BlockSpec((1, h), lambda i, k: (0, 0)),     # bias (lane-dense)
            ],
            out_specs=pl.BlockSpec((tm, h), lambda i, k: (i, 0)),
            scratch_shapes=[pltpu.VMEM((tm, h), jnp.float32)],
        ),
        compiler_params=pltpu.CompilerParams(
            dimension_semantics=("parallel", "arbitrary"),
            vmem_limit_bytes=48 * 1024 * 1024,
        ),
    )(a, xw, in_scale, bias)


# --------------------------------------------------------------------------
# Wrapper: padding, degree pre-pass, two GraphConv layers.
# --------------------------------------------------------------------------
def gcn_forward(adj, x, w1, b1, w2, b2, *, tile=512):
    """adj: (N, N) dense A[dst, src]; x: (N, F_in); returns (N, num_classes) f32."""
    n, f_in = x.shape
    hid = w1.shape[1]
    num_classes = w2.shape[1]

    t, npad = _pick_tile(n, tile)
    fpad = _round_up(f_in, 128)
    hpad = _round_up(hid, 128)
    cpad = _round_up(num_classes, 128)

    # int8 {0,1} adjacency container (exact); the dominant HBM stream is now 1 B/edge.
    adj_p = jnp.zeros((npad, npad), jnp.int8).at[:n, :n].set(adj.astype(jnp.int8))

    # Degree pre-pass straight off the padded int8 adjacency (no f32 N^2 copy).
    # Padded rows/cols have degree 0 -> clamped to 1 -> scale 1 (harmless; sliced off).
    in_scale = jax.lax.rsqrt(
        jnp.maximum(jnp.sum(adj_p, axis=1, dtype=jnp.float32), 1.0)).reshape(npad, 1)
    out_scale = jax.lax.rsqrt(
        jnp.maximum(jnp.sum(adj_p, axis=0, dtype=jnp.float32), 1.0)).reshape(npad, 1)

    # Features / weights in bf16 for the MXU fast path; biases stay f32 (epilogue add).
    x_p = jnp.zeros((npad, fpad), jnp.bfloat16).at[:n, :f_in].set(
        x.astype(jnp.bfloat16))
    w1_p = jnp.zeros((fpad, hpad), jnp.bfloat16).at[:f_in, :hid].set(
        w1.astype(jnp.bfloat16))
    b1_p = jnp.zeros((1, hpad), jnp.float32).at[0, :hid].set(b1.astype(jnp.float32))
    w2_p = jnp.zeros((hpad, cpad), jnp.bfloat16).at[:hid, :num_classes].set(
        w2.astype(jnp.bfloat16))
    b2_p = jnp.zeros((1, cpad), jnp.float32).at[0, :num_classes].set(
        b2.astype(jnp.float32))

    # --- layer 1: relu(A_hat @ X @ W1 + b1); h1 kept in bf16 for the layer-2 pass ---
    xw1 = _feature_transform(x_p, w1_p, out_scale, tm=t)
    h1 = _aggregate(adj_p, xw1, in_scale, b1_p, relu=True,
                    out_dtype=jnp.bfloat16, tm=t, tk=t)

    # dropout(p=0.01, training=False) is the identity in eval mode.
    # TODO(synk): if training=True were needed, add a pltpu.prng_seed /
    # pltpu.prng_random_bits dropout mask in the aggregation epilogue.

    # --- layer 2: A_hat @ h1 @ W2 + b2 (final output in f32) ---
    hw2 = _feature_transform(h1, w2_p, out_scale, tm=t)
    out = _aggregate(adj_p, hw2, in_scale, b2_p, relu=False,
                     out_dtype=jnp.float32, tm=t, tk=t)

    return out[:n, :num_classes]


def gcn_reference(adj, x, w1, b1, w2, b2):
    """Pure-JAX f32 reference of the same dense GCN forward."""
    in_deg = jnp.maximum(adj.sum(axis=1, keepdims=True), 1.0)
    out_deg = jnp.maximum(adj.sum(axis=0, keepdims=True), 1.0)
    a_norm = jax.lax.rsqrt(in_deg) * adj * jax.lax.rsqrt(out_deg)
    h1 = jnp.maximum(a_norm @ (x @ w1) + b1, 0.0)
    return a_norm @ (h1 @ w2) + b2


if __name__ == "__main__":
    # Small shapes consistent with the module: N nodes, in_feats, hid_feats, classes.
    N, IN_FEATS, HID_FEATS, NUM_CLASSES = 16, 8, 32, 4

    key = jax.random.PRNGKey(0)
    k_adj, k_x, k_w1, k_w2 = jax.random.split(key, 4)

    # Deterministic synthetic directed graph, dense adjacency A[dst, src].
    adj = (jax.random.uniform(k_adj, (N, N)) < 0.3).astype(jnp.float32)

    # Node features.
    x = jax.random.normal(k_x, (N, IN_FEATS), dtype=jnp.float32)

    # GraphConv parameters: weight (in, out), bias (out,) zeros.
    w1 = jax.random.normal(k_w1, (IN_FEATS, HID_FEATS), dtype=jnp.float32) * 0.1
    b1 = jnp.zeros((HID_FEATS,), dtype=jnp.float32)
    w2 = jax.random.normal(k_w2, (HID_FEATS, NUM_CLASSES), dtype=jnp.float32) * 0.1
    b2 = jnp.zeros((NUM_CLASSES,), dtype=jnp.float32)

    out = gcn_forward(adj, x, w1, b1, w2, b2)
    out = jax.block_until_ready(out)

    ref = gcn_reference(adj, x, w1, b1, w2, b2)
    assert out.shape == (N, NUM_CLASSES)
    # bf16 feature/weight path -> loosened tolerance vs the f32 reference.
    assert jnp.allclose(out, ref, atol=2e-2, rtol=2e-2), (
        float(jnp.max(jnp.abs(out - ref))))

    print("KERNEL_OK")
</pallas_src>

<mosaic_0001>
module attributes {stable_mosaic.version = 11 : i64} {
  func.func @_transform_kernel(%arg0: i32, %arg1: memref<128x128xbf16, #tpu.memory_space<vmem>>, %arg2: memref<128x128xbf16, #tpu.memory_space<vmem>>, %arg3: memref<128x1xf32, #tpu.memory_space<vmem>>, %arg4: memref<128x128xbf16, #tpu.memory_space<vmem>>) attributes {dimension_semantics = [#tpu.dimension_semantics<parallel>], iteration_bounds = array<i64: 1>, scalar_prefetch = 0 : i64, scratch_operands = 0 : i64, tpu.core_type = #tpu.core_type<tc>, window_params = [{transform_indices = @transform_0, window_bounds = array<i64: 128, 128>}, {pipeline_mode = #tpu.pipeline_mode<synchronous>, transform_indices = @transform_1, window_bounds = array<i64: 128, 128>}, {transform_indices = @transform_2, window_bounds = array<i64: 128, 1>}, {transform_indices = @transform_3, window_bounds = array<i64: 128, 128>}]} {
    %c0 = arith.constant 0 : index
    %c0_0 = arith.constant 0 : index
    %0 = vector.load %arg1[%c0, %c0_0] : memref<128x128xbf16, #tpu.memory_space<vmem>>, vector<128x128xbf16>
    %c0_1 = arith.constant 0 : index
    %c0_2 = arith.constant 0 : index
    %1 = vector.load %arg2[%c0_1, %c0_2] : memref<128x128xbf16, #tpu.memory_space<vmem>>, vector<128x128xbf16>
    %cst = arith.constant dense<0.000000e+00> : vector<128x128xf32>
    %2 = tpu.matmul %0, %1, %cst {dimension_numbers = #tpu.dot_dimension_numbers<[1], [0], [0], [1], [0, 0, 1, 1], [], []>} : vector<128x128xbf16>, vector<128x128xbf16>, vector<128x128xf32> -> vector<128x128xf32>
    %c0_3 = arith.constant 0 : index
    %c0_4 = arith.constant 0 : index
    %3 = vector.load %arg3[%c0_3, %c0_4] : memref<128x1xf32, #tpu.memory_space<vmem>>, vector<128x1xf32>
    %4 = vector.broadcast %3 : vector<128x1xf32> to vector<128x128xf32>
    %5 = arith.mulf %4, %2 : vector<128x128xf32>
    %6 = arith.truncf %5 : vector<128x128xf32> to vector<128x128xbf16>
    %c0_5 = arith.constant 0 : index
    %c0_6 = arith.constant 0 : index
    %7 = vector.load %arg4[%c0_5, %c0_6] : memref<128x128xbf16, #tpu.memory_space<vmem>>, vector<128x128xbf16>
    tpu.vector_store %arg4[%c0_5, %c0_6], %6 {strides = array<i32>} : memref<128x128xbf16, #tpu.memory_space<vmem>>, vector<128x128xbf16>,
    return
  }
  func.func @transform_0(%arg0: i32) -> (i32, i32) {
    %c0_i32 = arith.constant 0 : i32
    %c0_i32_0 = arith.constant 0 : i32
    return %arg0, %c0_i32 : i32, i32
  }
  func.func @transform_1(%arg0: i32) -> (i32, i32) {
    %c0_i32 = arith.constant 0 : i32
    %c0_i32_0 = arith.constant 0 : i32
    %c0_i32_1 = arith.constant 0 : i32
    return %c0_i32, %c0_i32_0 : i32, i32
  }
  func.func @transform_2(%arg0: i32) -> (i32, i32) {
    %c0_i32 = arith.constant 0 : i32
    %c0_i32_0 = arith.constant 0 : i32
    return %arg0, %c0_i32 : i32, i32
  }
  func.func @transform_3(%arg0: i32) -> (i32, i32) {
    %c0_i32 = arith.constant 0 : i32
    %c0_i32_0 = arith.constant 0 : i32
    return %arg0, %c0_i32 : i32, i32
  }
}

</mosaic_0001>

<bundles_post_ra>
// kernel: tpu_custom_call.1
= control target key start
LH: loop header
LB: loop body
LE: loop exit
PB: predicated region body
PF: predicated region fallthrough
CT: control target
= control target key end

     0   :  { %v538_v2 = vmov 0   ;;  %s661_s0 = inlined_call_operand.vmem [shape: bf16[128,128], index: 0, kind: input, shape index: {}]   ;;  %s662_s1 = inlined_call_operand.vmem [shape: bf16[128,128], index: 1, kind: input, shape index: {}]   ;;  %s663_s2 = inlined_call_operand.vmem [shape: f32[128,1], index: 2, kind: input, shape index: {}]   ;;  %s664_s3 = inlined_call_operand.hbm [shape: bf16[128,128], index: 3, kind: output, shape index: {}]  }
   0x1   :  { %v192_v0 = vld [vmem:[%s663_s2] sm:$0xff]  ;;  %v433_v1 = vld [vmem:[%s662_s1 + $0x38] sm:$0xff]  ;;  %509 = vset.pattern.permute.xlu0 %v538_v2  ;;  %510 = vset.pattern.permute.xlu1 %v538_v2  ;;  %v194_v3 = vld [vmem:[%s663_s2 + $0x10] sm:$0xff] }
   0x2   :  { %210 = vperm.xlu0 %509, %v192_v0   ;;  %143 = vmatpush.bf16.msra.mxu0 %v433_v1  ;;  %v432_v4 = vld [vmem:[%s662_s1 + $0x30] sm:$0xff]  ;;  %v431_v5 = vld [vmem:[%s662_s1 + $0x28] sm:$0xff]  ;;  %v196_v6 = vld [vmem:[%s663_s2 + $0x20] sm:$0xff] }
   0x3   :  { %481 = vmatpush.bf16.msra.mxu1 %v433_v1  ;;  %482 = vmatpush.bf16.msra.mxu2 %v433_v1  ;;  %v193_v7 = vld [vmem:[%s663_s2 + $0x8] sm:$0xff] }
   0x4   :  { %483 = vmatpush.bf16.msra.mxu3 %v433_v1  ;;  %220 = vperm.xlu1 %510, %v194_v3  }
   0x5   :  { %511 = vset.pattern.permute.xlu2 %v538_v2 }
   0x6   :  { %144 = vmatpush.bf16.msra.mxu0 %v432_v4 }
   0x7   :  { %484 = vmatpush.bf16.msra.mxu1 %v432_v4  ;;  %485 = vmatpush.bf16.msra.mxu2 %v432_v4 }
   0x8   :  { %8 = vsyncpa [#allocation3], 0  ;;  %486 = vmatpush.bf16.msra.mxu3 %v432_v4  ;;  %230 = vperm.xlu2 %511, %v196_v6   ;;  %v195_v8 = vld [vmem:[%s663_s2 + $0x18] sm:$0xff]  ;;  %v430_v9 = vld [vmem:[%s662_s1 + $0x20] sm:$0xff]  ;;  %s342_s23 = sshll.u32 %s664_s3, 4  ;;  %s540_s24 = smov 64   ;;  %s343_s23 = int_to_ptr.hbm [resolvable:$true] %s342_s23 }
   0x9   :  { %v197_v10 = vld [vmem:[%s663_s2 + $0x28] sm:$0xff]  ;;  %v429_v11 = vld [vmem:[%s662_s1 + $0x18] sm:$0xff]  ;;  %v198_v12 = vld [vmem:[%s663_s2 + $0x30] sm:$0xff]  ;;  %s541_s25 = smov 4  }
   0xa   :  { %215 = vperm.xlu0 %509, %v193_v7   ;;  %145 = vmatpush.bf16.msra.mxu0 %v431_v5  ;;  %v199_v13 = vld [vmem:[%s663_s2 + $0x38] sm:$0xff]  ;;  %v428_v14 = vld [vmem:[%s662_s1 + $0x10] sm:$0xff]  ;;  %v200_v15 = vld [vmem:[%s663_s2 + $0x40] sm:$0xff] }
   0xb   :  { %487 = vmatpush.bf16.msra.mxu1 %v431_v5  ;;  %488 = vmatpush.bf16.msra.mxu2 %v431_v5  ;;  %v427_v16 = vld [vmem:[%s662_s1 + $0x8] sm:$0xff]  ;;  %v202_v18 = vld [vmem:[%s663_s2 + $0x50] sm:$0xff]  ;;  %v426_v19 = vld [vmem:[%s662_s1] sm:$0xff] }
   0xc   :  { %489 = vmatpush.bf16.msra.mxu3 %v431_v5  ;;  %225 = vperm.xlu1 %510, %v195_v8   ;;  %v201_v17 = vld [vmem:[%s663_s2 + $0x48] sm:$0xff]  ;;  %v418_v20 = vld [vmem:[%s661_s0] sm:$0xff]  ;;  %v203_v21 = vld [vmem:[%s663_s2 + $0x58] sm:$0xff] }
   0xd   :  { %v420_v22 = vld [vmem:[%s661_s0 + $0x10] sm:$0xff]  ;;  %v204_v23 = vld [vmem:[%s663_s2 + $0x60] sm:$0xff]  ;;  %v205_v26 = vld [vmem:[%s663_s2 + $0x68] sm:$0xff] }
   0xe   :  { %146 = vmatpush.bf16.msra.mxu0 %v430_v9  ;;  %v422_v24 = vld [vmem:[%s661_s0 + $0x20] sm:$0xff]  ;;  %v424_v25 = vld [vmem:[%s661_s0 + $0x30] sm:$0xff]  ;;  %v207_v28 = vld [vmem:[%s663_s2 + $0x78] sm:$0xff] }
   0xf   :  { %490 = vmatpush.bf16.msra.mxu1 %v430_v9  ;;  %491 = vmatpush.bf16.msra.mxu2 %v430_v9  ;;  %v206_v27 = vld [vmem:[%s663_s2 + $0x70] sm:$0xff]  ;;  %v419_v29 = vld [vmem:[%s661_s0 + $0x8] sm:$0xff]  ;;  %v421_v30 = vld [vmem:[%s661_s0 + $0x18] sm:$0xff] }
  0x10   :  { %492 = vmatpush.bf16.msra.mxu3 %v430_v9  ;;  %235 = vperm.xlu2 %511, %v197_v10   ;;  %v423_v31 = vld [vmem:[%s661_s0 + $0x28] sm:$0xff]  ;;  %v425_v32 = vld [vmem:[%s661_s0 + $0x38] sm:$0xff]  ;;  %s539_s0 = smov [#allocation2]  }
  0x11   :  { %s340_s2 = sshll.u32 %s539_s0, 4  ;;  %s341_s2 = int_to_ptr.vmem [resolvable:$true] %s340_s2 }
  0x12   :  { %240 = vperm.xlu0 %509, %v198_v12   ;;  %147 = vmatpush.bf16.msra.mxu0 %v429_v11 }
  0x13   :  { %493 = vmatpush.bf16.msra.mxu1 %v429_v11  ;;  %494 = vmatpush.bf16.msra.mxu2 %v429_v11 }
  0x14   :  { %495 = vmatpush.bf16.msra.mxu3 %v429_v11  ;;  %245 = vperm.xlu1 %510, %v199_v13  }
  0x16   :  { %148 = vmatpush.bf16.msra.mxu0 %v428_v14 }
  0x17   :  { %496 = vmatpush.bf16.msra.mxu1 %v428_v14  ;;  %497 = vmatpush.bf16.msra.mxu2 %v428_v14 }
  0x18   :  { %498 = vmatpush.bf16.msra.mxu3 %v428_v14  ;;  %250 = vperm.xlu2 %511, %v200_v15  }
  0x1a   :  { %255 = vperm.xlu0 %509, %v201_v17   ;;  %149 = vmatpush.bf16.msra.mxu0 %v427_v16 }
  0x1b   :  { %499 = vmatpush.bf16.msra.mxu1 %v427_v16  ;;  %500 = vmatpush.bf16.msra.mxu2 %v427_v16 }
  0x1c   :  { %501 = vmatpush.bf16.msra.mxu3 %v427_v16  ;;  %260 = vperm.xlu1 %510, %v202_v18  }
  0x1e   :  { %150 = vmatpush.bf16.msra.mxu0 %v426_v19 }
  0x1f   :  { %502 = vmatpush.bf16.msra.mxu1 %v426_v19  ;;  %503 = vmatpush.bf16.msra.mxu2 %v426_v19 }
  0x20   :  { %504 = vmatpush.bf16.msra.mxu3 %v426_v19  ;;  %265 = vperm.xlu2 %511, %v203_v21  }
  0x21   :  { %151 = vmatmul.bf16.vlgmr.msra.gmra.mxu0 %v418_v20 }
  0x22   :  { %270 = vperm.xlu0 %509, %v204_v23   ;;  %161 = vmatmul.bf16.vlgmr.msra.gmra.mxu1 %v420_v22 }
  0x23   :  { %171 = vmatmul.bf16.vlgmr.msra.gmra.mxu2 %v422_v24  ;;  %181 = vmatmul.bf16.vlgmr.msra.gmra.mxu3 %v424_v25 }
  0x24   :  { %275 = vperm.xlu1 %510, %v205_v26  }
  0x28   :  { %280 = vperm.xlu2 %511, %v206_v27  }
  0x2a   :  { %285 = vperm.xlu0 %509, %v207_v28  }
  0x31   :  { %156 = vmatmul.bf16.gmra.mxu0 %v419_v29 }
  0x32   :  { %166 = vmatmul.bf16.gmra.mxu1 %v421_v30 }
  0x33   :  { %176 = vmatmul.bf16.gmra.mxu2 %v423_v31  ;;  %186 = vmatmul.bf16.gmra.mxu3 %v425_v32 }
  0x62   :  { %v231_v37 = vpop.permute.xlu2 %230 }
  0x6a   :  { %v236_v41 = vpop.permute.xlu2 %235 }
  0x72   :  { %v251_v53 = vpop.permute.xlu2 %250 }
  0x74   :  { %v211_v33 = vpop.permute.xlu0 %210 }
  0x76   :  { %v221_v34 = vpop.permute.xlu1 %220 }
  0x7a   :  { %v266_v4 = vpop.permute.xlu2 %265 }
  0x7c   :  { %v216_v35 = vpop.permute.xlu0 %215 }
  0x7e   :  { %v226_v36 = vpop.permute.xlu1 %225 }
  0x82   :  { %v281_v16 = vpop.permute.xlu2 %280 }
  0x84   :  { %v241_v38 = vpop.permute.xlu0 %240 }
  0x86   :  { %v246_v39 = vpop.permute.xlu1 %245 }
  0x8c   :  { %v256_v43 = vpop.permute.xlu0 %255 }
  0x8e   :  { %v261_v44 = vpop.permute.xlu1 %260 }
  0x94   :  { %v271_v56 = vpop.permute.xlu0 %270 }
  0x96   :  { %v276_v57 = vpop.permute.xlu1 %275 }
  0x9c   :  { %v286_v15 = vpop.permute.xlu0 %285 }
  0x9e   :  { %v152_v40 = vpop.f32.mrf.mxu0 }
  0x9f   :  { %v162_v42 = vpop.f32.mrf.mxu1  ;;  %v288_v49 = vmul.f32 %v211_v33, %v152_v40 }
  0xa0   :  { %v292_v50 = vmul.f32 %v231_v37, %v162_v42 }
  0xa6   :  { %v172_v45 = vpop.f32.mrf.mxu2  ;;  %v182_v46 = vpop.f32.mrf.mxu3 }
  0xa7   :  { %v154_v47 = vpop.f32.mrf.mxu0  ;;  %v164_v48 = vpop.f32.mrf.mxu1  ;;  %v296_v60 = vmul.f32 %v251_v53, %v172_v45  ;;  %v300_v61 = vmul.f32 %v271_v56, %v182_v46 }
  0xa8   :  { %v289_v51 = vmul.f32 %v216_v35, %v154_v47  ;;  %v293_v52 = vmul.f32 %v236_v41, %v164_v48 }
  0xaa   :  { %v437_v54 = vpack.c.bf16 %v289_v51, %v288_v49  ;;  %v447_v55 = vpack.c.bf16 %v293_v52, %v292_v50 }
  0xac   :  { %438 = vst [vmem:[#allocation2] sm:$0xff] %v437_v54  }
  0xad   :  { %475 = vst [vmem:[#allocation2 + $0x10] sm:$0xff] %v447_v55  }
  0xae   :  { %v174_v58 = vpop.f32.mrf.mxu2  ;;  %v184_v59 = vpop.f32.mrf.mxu3 }
  0xaf   :  { %v297_v62 = vmul.f32 %v256_v43, %v174_v58  ;;  %v301_v63 = vmul.f32 %v276_v57, %v184_v59  ;;  %v157_v0 = vpop.f32.mrf.mxu0  ;;  %v167_v1 = vpop.f32.mrf.mxu1 }
  0xb0   :  { %v290_v9 = vmul.f32 %v221_v34, %v157_v0  ;;  %v294_v10 = vmul.f32 %v241_v38, %v167_v1 }
  0xb1   :  { %v457_v2 = vpack.c.bf16 %v297_v62, %v296_v60  ;;  %v467_v3 = vpack.c.bf16 %v301_v63, %v300_v61 }
  0xb3   :  { %477 = vst [vmem:[#allocation2 + $0x20] sm:$0xff] %v457_v2  }
  0xb4   :  { %479 = vst [vmem:[#allocation2 + $0x30] sm:$0xff] %v467_v3  }
  0xb6   :  { %v177_v5 = vpop.f32.mrf.mxu2  ;;  %v187_v6 = vpop.f32.mrf.mxu3 }
  0xb7   :  { %v159_v7 = vpop.f32.mrf.mxu0  ;;  %v169_v8 = vpop.f32.mrf.mxu1  ;;  %v298_v19 = vmul.f32 %v261_v44, %v177_v5  ;;  %v302_v20 = vmul.f32 %v281_v16, %v187_v6 }
  0xb8   :  { %v291_v11 = vmul.f32 %v226_v36, %v159_v7  ;;  %v295_v12 = vmul.f32 %v246_v39, %v169_v8 }
  0xba   :  { %v442_v13 = vpack.c.bf16 %v291_v11, %v290_v9  ;;  %v452_v14 = vpack.c.bf16 %v295_v12, %v294_v10 }
  0xbc   :  { %474 = vst [vmem:[#allocation2 + $0x8] sm:$0xff] %v442_v13  }
  0xbd   :  { %476 = vst [vmem:[#allocation2 + $0x18] sm:$0xff] %v452_v14  }
  0xbe   :  { %v179_v17 = vpop.f32.mrf.mxu2  ;;  %v189_v18 = vpop.f32.mrf.mxu3 }
  0xbf   :  { %v299_v21 = vmul.f32 %v266_v4, %v179_v17  ;;  %v303_v22 = vmul.f32 %v286_v15, %v189_v18 }
  0xc1   :  { %v462_v23 = vpack.c.bf16 %v299_v21, %v298_v19  ;;  %v472_v24 = vpack.c.bf16 %v303_v22, %v302_v20 }
  0xc3   :  { %478 = vst [vmem:[#allocation2 + $0x28] sm:$0xff] %v462_v23  }
  0xc4   :  { %480 = vst [vmem:[#allocation2 + $0x38] sm:$0xff] %v472_v24  }
  0xc5   :  { %348 = dma.vmem_to_hbm [thread:$0]  %s341_s2, 1024, %s343_s23, [#allocation3], %s540_s24, %s540_s24, %s541_s25  }
  0xc6   :  { %536 = dma.done.wait [#allocation3], 1024  }
  0xc7   :  { %537 = vsyncadd [#allocation3], 4294966272 }
  0xc8   :  { %353 = vsyncpa [#allocation3], 1 }

</bundles_post_ra>
